<compile_context>
chip_gen: v7x
topology: tpu7x:2x2x1
jax: 0.10.0
libtpu: 0.0.40
codegen_flags: <defaults>
</compile_context>

<pallas_src>
import functools

import jax
import jax.numpy as jnp
from jax import lax
from jax.experimental import pallas as pl
from jax.experimental.pallas import tpu as pltpu

_LANES = 128
_TARGET_BLOCK_BYTES = 4 * 1024 * 1024   # ~4 MiB per input block per step
_VMEM_LIMIT_BYTES = 48 * 1024 * 1024    # covers 2 inputs x 2 bufs x 4 MiB + temps
_MIN_PALLAS_ROWS = 8                    # below this, plain jnp is cheaper
_SPLIT_ROWS = 2048                      # single-block mid-size tensors: split for megacore


def _pow_alpha(sq, alpha):
    """Static fast paths avoid the log+exp EUP path when possible."""
    if alpha == 1.0:
        return sq
    if alpha == 0.5:
        return jnp.sqrt(sq)
    return jnp.power(sq, jnp.float32(alpha))


def _charbonnier_block_kernel(x_ref, y_ref, o_ref, *, eps, alpha, m_rows,
                              tile_rows, needs_mask):
    i = pl.program_id(0)

    x = x_ref[...].astype(jnp.float32)
    y = y_ref[...].astype(jnp.float32)
    d = x - y
    sq = d * d + jnp.float32(eps)
    val = _pow_alpha(sq, alpha)

    def _reduce8(v):
        # (tile_rows, 128) -> (tile_rows//8, 8, 128) -> sum over leading axis.
        # Pure VPU vreg adds; no cross-sublane XLU reduce, lane-dense (8,128)
        # store (tile_rows is always a multiple of 8 here).
        return v.reshape(tile_rows // 8, 8, _LANES).sum(axis=0)

    if not needs_mask:
        # Steady state: every row of every block is valid.
        o_ref[...] = _reduce8(val)
    else:
        is_last = i == pl.num_programs(0) - 1

        @pl.when(jnp.logical_not(is_last))
        def _():
            o_ref[...] = _reduce8(val)

        @pl.when(is_last)
        def _():
            # Mask the Pallas partial-block row overhang (garbage rows).  The
            # select (not multiply-by-mask) guarantees NaN/Inf from garbage is
            # never propagated into the sum.
            rows = lax.broadcasted_iota(jnp.int32, val.shape, 0)
            row_global = i * tile_rows + rows
            masked = jnp.where(row_global < m_rows, val, 0.0)
            o_ref[...] = _reduce8(masked)


def charbonnier_loss(x, y, eps=1e-06, alpha=0.45, block_rows=None):
    # TODO(synk): complex inputs are not handled (real-valued path only).
    assert x.shape == y.shape, (x.shape, y.shape)
    n = int(x.size)
    eps = float(eps)
    alpha = float(alpha)

    flat_x = x.reshape(-1)
    flat_y = y.reshape(-1)

    def _jnp_partial_sum(xs, ys):
        d = xs.astype(jnp.float32) - ys.astype(jnp.float32)
        return jnp.sum(_pow_alpha(d * d + jnp.float32(eps), alpha))

    # Lane-aligned body handled by Pallas; <128-element tail handled in jnp
    # (no full-tensor pad / copy for unaligned sizes).
    tail = n % _LANES
    body = n - tail
    m_rows = body // _LANES

    if m_rows < _MIN_PALLAS_ROWS:
        # Tiny input: a kernel launch is pure overhead.
        return _jnp_partial_sum(flat_x, flat_y) / jnp.float32(n)

    itemsize = int(jnp.dtype(x.dtype).itemsize)
    # Sublane packing: 8 rows for 4-byte, 16 for 2-byte, 32 for 1-byte dtypes.
    row_align = max(8, 32 // itemsize)

    def _round_up(v, m):
        return ((v + m - 1) // m) * m

    # Byte-targeted, dtype-aware tile rows (same bytes/step regardless of dtype).
    tr_target = max(row_align,
                    (_TARGET_BLOCK_BYTES // (_LANES * itemsize))
                    // row_align * row_align)

    if block_rows is not None:
        tr = _round_up(max(1, min(int(block_rows), m_rows)), row_align)
    elif m_rows <= tr_target:
        if m_rows >= 2 * _SPLIT_ROWS:
            # Mid-size tensor: keep at least 2 blocks so the "parallel" axis
            # can shard across both TensorCores on v7x.
            tr = _round_up(pl.cdiv(m_rows, 2), row_align)
        else:
            tr = _round_up(m_rows, row_align)
    else:
        tr = tr_target

    grid_size = pl.cdiv(m_rows, tr)
    needs_mask = (grid_size * tr) != m_rows

    if tail:
        body_x = flat_x[:body]
        body_y = flat_y[:body]
    else:
        body_x, body_y = flat_x, flat_y
    x2d = body_x.reshape(m_rows, _LANES)
    y2d = body_y.reshape(m_rows, _LANES)

    kernel = functools.partial(
        _charbonnier_block_kernel,
        eps=eps, alpha=alpha, m_rows=m_rows, tile_rows=tr,
        needs_mask=needs_mask)

    if alpha == 1.0:
        transcendentals = 0
    elif alpha == 0.5:
        transcendentals = body
    else:
        transcendentals = 2 * body  # pow -> log + exp
    cost = pl.CostEstimate(
        flops=5 * body,
        transcendentals=transcendentals,
        bytes_accessed=2 * body * itemsize + grid_size * 8 * _LANES * 4,
    )

    partials = pl.pallas_call(
        kernel,
        out_shape=jax.ShapeDtypeStruct((grid_size * 8, _LANES), jnp.float32),
        grid_spec=pltpu.PrefetchScalarGridSpec(
            num_scalar_prefetch=0,
            grid=(grid_size,),
            in_specs=[
                pl.BlockSpec((tr, _LANES), lambda i: (i, 0)),
                pl.BlockSpec((tr, _LANES), lambda i: (i, 0)),
            ],
            out_specs=pl.BlockSpec((8, _LANES), lambda i: (i, 0)),
        ),
        compiler_params=pltpu.CompilerParams(
            dimension_semantics=("parallel",),
            vmem_limit_bytes=_VMEM_LIMIT_BYTES,
        ),
        cost_estimate=cost,
    )(x2d, y2d)

    total = jnp.sum(partials)
    if tail:
        total = total + _jnp_partial_sum(flat_x[body:], flat_y[body:])
    return total / jnp.float32(n)


def _charbonnier_ref(x, y, eps=1e-06, alpha=0.45):
    diff = x.astype(jnp.float32) - y.astype(jnp.float32)
    return jnp.mean(jnp.power(diff * diff + eps, alpha))


if __name__ == "__main__":
    key = jax.random.PRNGKey(0)
    kx, ky = jax.random.split(key)

    # NCHW, small shapes: batch=2, channels=4, spatial=16 (128-aligned body).
    x = jax.random.normal(kx, (2, 4, 16, 16), dtype=jnp.float32)
    y = jax.random.normal(ky, (2, 4, 16, 16), dtype=jnp.float32)
    loss = charbonnier_loss(x, y)
    jax.block_until_ready(loss)
    ref = _charbonnier_ref(x, y)
    assert jnp.allclose(loss, ref, rtol=1e-5, atol=1e-6), (loss, ref)

    # Unaligned size: masked row-overhang in the kernel + jnp tail (<128 elems).
    x2 = jax.random.normal(kx, (3, 5, 17, 13), dtype=jnp.float32)
    y2 = jax.random.normal(ky, (3, 5, 17, 13), dtype=jnp.float32)
    loss2 = charbonnier_loss(x2, y2)
    jax.block_until_ready(loss2)
    ref2 = _charbonnier_ref(x2, y2)
    assert jnp.allclose(loss2, ref2, rtol=1e-5, atol=1e-6), (loss2, ref2)

    # bf16 + forced small blocks: multi-block grid, masked last block.
    x3 = jax.random.normal(kx, (3, 5, 17, 13), dtype=jnp.bfloat16)
    y3 = jax.random.normal(ky, (3, 5, 17, 13), dtype=jnp.bfloat16)
    loss3 = charbonnier_loss(x3, y3, block_rows=8)
    jax.block_until_ready(loss3)
    ref3 = _charbonnier_ref(x3, y3)
    assert jnp.allclose(loss3, ref3, rtol=1e-4, atol=1e-5), (loss3, ref3)

    print("KERNEL_OK")
</pallas_src>

<mosaic_0001>
module attributes {stable_mosaic.version = 11 : i64} {
  func.func @_charbonnier_block_kernel(%arg0: i32, %arg1: memref<16x128xf32, #tpu.memory_space<vmem>>, %arg2: memref<16x128xf32, #tpu.memory_space<vmem>>, %arg3: memref<8x128xf32, #tpu.memory_space<vmem>>) attributes {dimension_semantics = [#tpu.dimension_semantics<parallel>], iteration_bounds = array<i64: 1>, scalar_prefetch = 0 : i64, scratch_operands = 0 : i64, tpu.core_type = #tpu.core_type<tc>, window_params = [{transform_indices = @transform_0, window_bounds = array<i64: 16, 128>}, {transform_indices = @transform_1, window_bounds = array<i64: 16, 128>}, {transform_indices = @transform_2, window_bounds = array<i64: 8, 128>}]} {
    %c0 = arith.constant 0 : index
    %c0_0 = arith.constant 0 : index
    %0 = vector.load %arg1[%c0, %c0_0] : memref<16x128xf32, #tpu.memory_space<vmem>>, vector<16x128xf32>
    %c0_1 = arith.constant 0 : index
    %c0_2 = arith.constant 0 : index
    %1 = vector.load %arg2[%c0_1, %c0_2] : memref<16x128xf32, #tpu.memory_space<vmem>>, vector<16x128xf32>
    %2 = arith.subf %0, %1 : vector<16x128xf32>
    %3 = arith.mulf %2, %2 : vector<16x128xf32>
    %cst = arith.constant 9.99999997E-7 : f32
    %4 = vector.broadcast %cst : f32 to vector<16x128xf32>
    %5 = arith.addf %3, %4 : vector<16x128xf32>
    %cst_3 = arith.constant 4.500000e-01 : f32
    %6 = vector.broadcast %cst_3 : f32 to vector<16x128xf32>
    %7 = math.powf %5, %6 : vector<16x128xf32>
    %8 = vector.shape_cast %7 : vector<16x128xf32> to vector<2x8x128xf32>
    %cst_4 = arith.constant dense<0.000000e+00> : vector<8x128xf32>
    %9 = vector.multi_reduction <add>, %8, %cst_4 [0] : vector<2x8x128xf32> to vector<8x128xf32>
    %c0_5 = arith.constant 0 : index
    %c0_6 = arith.constant 0 : index
    %10 = vector.load %arg3[%c0_5, %c0_6] : memref<8x128xf32, #tpu.memory_space<vmem>>, vector<8x128xf32>
    tpu.vector_store %arg3[%c0_5, %c0_6], %9 {strides = array<i32>} : memref<8x128xf32, #tpu.memory_space<vmem>>, vector<8x128xf32>,
    return
  }
  func.func @transform_0(%arg0: i32) -> (i32, i32) {
    %c0_i32 = arith.constant 0 : i32
    %c0_i32_0 = arith.constant 0 : i32
    return %arg0, %c0_i32 : i32, i32
  }
  func.func @transform_1(%arg0: i32) -> (i32, i32) {
    %c0_i32 = arith.constant 0 : i32
    %c0_i32_0 = arith.constant 0 : i32
    return %arg0, %c0_i32 : i32, i32
  }
  func.func @transform_2(%arg0: i32) -> (i32, i32) {
    %c0_i32 = arith.constant 0 : i32
    %c0_i32_0 = arith.constant 0 : i32
    return %arg0, %c0_i32 : i32, i32
  }
}

</mosaic_0001>

<bundles_post_ra>
// kernel: tpu_custom_call.1
= control target key start
LH: loop header
LB: loop body
LE: loop exit
PB: predicated region body
PF: predicated region fallthrough
CT: control target
= control target key end

     0   :  { %7 = vsyncpa [#allocation3], 0  ;;  %s263_s0 = inlined_call_operand.hbm [shape: f32[16,128], index: 0, kind: input, shape index: {}]   ;;  %s264_s1 = inlined_call_operand.hbm [shape: f32[16,128], index: 1, kind: input, shape index: {}]   ;;  %s265_s2 = inlined_call_operand.hbm [shape: f32[8,128], index: 2, kind: output, shape index: {}]  }
   0x1   :  { %8 = vsyncpa [#allocation6], 0 }
   0x2   :  { %9 = vsyncpa [#allocation4], 0  ;;  %s207_s9 = smov [#allocation2]   ;;  %s135_s13 = scalar_lea.hbm %s263_s0, 256 }
   0x3   :  { %s15_s10 = sshll.u32 %s207_s9, 4  ;;  %p136_p0 = scmp.ne.s32.totalorder %s263_s0, %s135_s13  ;;  %s16_s10 = int_to_ptr.vmem [resolvable:$true] %s15_s10 }
   0x4   :  { %p139_p1 = scmp.lt.u32.totalorder %s135_s13, %s263_s0 }
   0x6   :  { %p141_p2 = pnand %p139_p1, %p136_p0 }
   0x8   :  { %144 = shalt.err (!%p141_p2)
}
   0x9   :  { %s145_s18 = scalar_lea.vmem %s16_s10, 256  ;;  %p150_p4 = scmp.lt.s32.totalorder %s16_s10, %s16_s10 }
   0xa   :  { %p146_p3 = scmp.ne.s32.totalorder %s16_s10, %s145_s18  ;;  %p151_p5 = scmp.lt.s32.totalorder %s145_s18, %s145_s18 }
   0xc   :  { %p152_p6 = por %p151_p5, %p150_p4 }
   0xe   :  { %p153_p7 = pnand %p152_p6, %p146_p3 }
  0x10   :  { %156 = shalt.err (!%p153_p7)
}
  0x11   :  { %s208_s19 = smov 128   ;;  %s209_s20 = smov 8  }
  0x12   :  { %21 = dma.hbm_to_vmem [thread:$0]  %s263_s0, 256, %s16_s10, [#allocation3], %s208_s19, %s208_s19, %s209_s20  }
  0x13   :  { %s210_s23 = smov [#allocation5]   ;;  %s157_s27 = scalar_lea.hbm %s264_s1, 256 }
  0x14   :  { %s27_s24 = sshll.u32 %s210_s23, 4  ;;  %p158_p8 = scmp.ne.s32.totalorder %s264_s1, %s157_s27  ;;  %s28_s24 = int_to_ptr.vmem [resolvable:$true] %s27_s24 }
  0x15   :  { %p161_p9 = scmp.lt.u32.totalorder %s157_s27, %s264_s1 }
  0x17   :  { %p163_p10 = pnand %p161_p9, %p158_p8 }
  0x19   :  { %166 = shalt.err (!%p163_p10)
}
  0x1a   :  { %s167_s4 = scalar_lea.vmem %s28_s24, 256  ;;  %p172_p12 = scmp.lt.s32.totalorder %s28_s24, %s28_s24 }
  0x1b   :  { %p168_p11 = scmp.ne.s32.totalorder %s28_s24, %s167_s4  ;;  %p173_p13 = scmp.lt.s32.totalorder %s167_s4, %s167_s4 }
  0x1d   :  { %p174_p0 = por %p173_p13, %p172_p12 }
  0x1f   :  { %p175_p1 = pnand %p174_p0, %p168_p11 }
  0x21   :  { %178 = shalt.err (!%p175_p1)
}
  0x22   :  { %33 = dma.hbm_to_vmem [thread:$0]  %s264_s1, 256, %s28_s24, [#allocation6], %s208_s19, %s208_s19, %s209_s20  }
  0x23   :  { %201 = dma.done.wait [#allocation3], 256  }
  0x24   :  { %202 = vsyncadd [#allocation3], 4294967040 }
  0x25   :  { %203 = dma.done.wait [#allocation6], 256  }
  0x26   :  { %204 = vsyncadd [#allocation6], 4294967040  ;;  %v40_v0 = vld [vmem:[#allocation2] sm:$0xff]  ;;  %v41_v1 = vld [vmem:[#allocation2 + $0x8] sm:$0xff]  ;;  %s211_s1 = smov [#allocation7]  }
  0x27   :  { %v42_v2 = vld [vmem:[#allocation5] sm:$0xff]  ;;  %v43_v3 = vld [vmem:[#allocation5 + $0x8] sm:$0xff]  ;;  %s60_s6 = sshll.u32 %s211_s1, 4  ;;  %s61_s6 = int_to_ptr.vmem [resolvable:$true] %s60_s6 }
  0x28   :  { %v44_v4 = vsub.f32 %v40_v0, %v42_v2  ;;  %v45_v5 = vsub.f32 %v41_v1, %v43_v3  ;;  %s179_s7 = scalar_lea.vmem %s61_s6, 128  ;;  %p184_p3 = scmp.lt.s32.totalorder %s61_s6, %s61_s6 }
  0x29   :  { %p180_p2 = scmp.ne.s32.totalorder %s61_s6, %s179_s7  ;;  %p185_p4 = scmp.lt.s32.totalorder %s179_s7, %s179_s7 }
  0x2a   :  { %v46_v6 = vmul.f32 %v44_v4, %v44_v4  ;;  %v47_v7 = vmul.f32 %v45_v5, %v45_v5 }
  0x2b   :  { %p186_p5 = por %p185_p4, %p184_p3 }
  0x2c   :  { %v48_v8 = vadd.f32 1e-06, %v46_v6  ;;  %v49_v9 = vadd.f32 1e-06, %v47_v7 }
  0x2d   :  { %p187_p6 = pnand %p186_p5, %p180_p2 }
  0x2e   :  { %v74_v10 = vand.u32 2147483647, %v48_v8  ;;  %v100_v11 = vand.u32 2147483647, %v49_v9  ;;  %vm78_vm0 = vcmp.lt.f32.partialorder %v48_v8, 0  ;;  %vm79_vm1 = vcmp.eq.f32.partialorder %v48_v8, 0 }
  0x2f   :  { %vm104_vm2 = vcmp.lt.f32.partialorder %v49_v9, 0  ;;  %vm105_vm4 = vcmp.eq.f32.partialorder %v49_v9, 0  ;;  %vm91_vm5 = vcmp.ne.f32.partialorder %v48_v8, %v48_v8  ;;  %vm80_vm7 = vcmp.eq.f32.partialorder %v48_v8, 1065353216 }
  0x30   :  { %127 = vlog2.f32 %v74_v10  ;;  %vm83_vm3 = vcmp.eq.f32.partialorder %v74_v10, 2139095040  ;;  %vm109_vm6 = vcmp.eq.f32.partialorder %v100_v11, 2139095040  ;;  %vm117_vm8 = vcmp.ne.f32.partialorder %v49_v9, %v49_v9 }
  0x31   :  { %129 = vlog2.f32 %v100_v11  ;;  %vm106_vm9 = vcmp.eq.f32.partialorder %v49_v9, 1065353216 }
  0x3a   :  { %v128_v12 = vpop.eup %127 }
  0x3b   :  { %v130_v13 = vpop.eup %129  ;;  %v76_v14 = vmul.f32 0.45, %v128_v12 }
  0x3c   :  { %v102_v15 = vmul.f32 0.45, %v130_v13 }
  0x3d   :  { %131 = vpow2.f32 %v76_v14 }
  0x3e   :  { %133 = vpow2.f32 %v102_v15 }
  0x47   :  { %v132_v16 = vpop.eup %131 }
  0x48   :  { %v134_v17 = vpop.eup %133  ;;  %v84_v18 = vsel %vm78_vm0, 2143289344, %v132_v16 }
  0x49   :  { %v85_v19 = vsel %vm79_vm1, 0, %v84_v18  ;;  %v110_v20 = vsel %vm104_vm2, 2143289344, %v134_v17 }
  0x4a   :  { %v90_v21 = vsel %vm83_vm3, 2139095040, %v85_v19  ;;  %v111_v22 = vsel %vm105_vm4, 0, %v110_v20 }
  0x4b   :  { %v94_v23 = vsel %vm91_vm5, 2143289344, %v90_v21  ;;  %v116_v24 = vsel %vm109_vm6, 2139095040, %v111_v22 }
  0x4c   :  { %v95_v25 = vsel %vm80_vm7, 1065353216, %v94_v23  ;;  %v120_v26 = vsel %vm117_vm8, 2143289344, %v116_v24 }
  0x4d   :  { %v121_v27 = vsel %vm106_vm9, 1065353216, %v120_v26 }
  0x4e   :  { %v52_v28 = vadd.f32 %v121_v27, %v95_v25 }
  0x50   :  { %53 = vst [vmem:[#allocation7] sm:$0xff] %v52_v28 }
  0x51   :  { %190 = shalt.err (!%p187_p6)
}
  0x52   :  { %s191_s10 = scalar_lea.hbm %s265_s2, 128 }
  0x53   :  { %p192_p7 = scmp.ne.s32.totalorder %s265_s2, %s191_s10  ;;  %p195_p8 = scmp.lt.u32.totalorder %s191_s10, %s265_s2 }
  0x55   :  { %p197_p9 = pnand %p195_p8, %p192_p7 }
  0x57   :  { %200 = shalt.err (!%p197_p9)
}
  0x58   :  { %63 = dma.vmem_to_hbm [thread:$0]  %s61_s6, 128, %s265_s2, [#allocation4]  }
  0x59   :  { %205 = dma.done.wait [#allocation4], 128  }
  0x5a   :  { %206 = vsyncadd [#allocation4], 4294967168 }
  0x5b   :  { %67 = vsyncpa [#allocation3], 1 }
  0x5c   :  { %68 = vsyncpa [#allocation6], 1 }
  0x5d   :  { %69 = vsyncpa [#allocation4], 1 }

</bundles_post_ra>
